<compile_context>
chip_gen: v5e
topology: v5e:2x2
jax: 0.10.0
libtpu: 0.0.40
codegen_flags: <defaults>
</compile_context>

<pallas_src>
import functools

import jax
import jax.numpy as jnp
from jax.experimental import pallas as pl
from jax.experimental.pallas import tpu as pltpu

LANE = 128           # lane width: hidden / logit padding target
BF16_SUBLANE = 16    # bf16 packs 16 sublanes per vreg -> row tiles must be multiples of 16
MAX_TM = 2048        # large row tiles: ~85% of HBM roofline vs ~63% at 256
SPLIT_TM = 256       # minimum per-step rows once we split for v7x's 2 TensorCores
MXU_DTYPE = jnp.bfloat16


def _round_up(n, m):
    return ((n + m - 1) // m) * m


def _choose_row_tile(batch):
    """Dtype-aware row tile; >=2 grid steps once the batch is large enough (v7x megacore)."""
    m16 = _round_up(max(int(batch), 1), BF16_SUBLANE)
    tm = min(MAX_TM, _round_up(pl.cdiv(m16, 2), SPLIT_TM), m16)
    return _round_up(tm, BF16_SUBLANE)


def _mlp_kernel(x1_ref, x2_ref, w1_ref, b1_ref, w2_ref, b2_ref, o1_ref, o2_ref):
    """Fused (x @ W1 + b1) -> ReLU -> (h @ W2 + b2), applied to the x1 tile and the x2 tile.

    Weights are pre-transposed to (in, out) and lane-padded, so both dots hit the MXU directly
    (no in-kernel transpose). x arrives f32 and is cast to bf16 in-register; accumulation,
    bias add and ReLU stay f32 on the VPU. Output is stored as bf16 (writeback halved).
    """
    w1 = w1_ref[...]
    b1 = b1_ref[...]
    w2 = w2_ref[...]
    b2 = b2_ref[...]

    def mlp(x_ref, o_ref):
        x = x_ref[...].astype(w1.dtype)                       # f32 -> bf16, in-register
        h = jnp.dot(x, w1, preferred_element_type=jnp.float32)
        h = jnp.maximum(h + b1, 0.0).astype(w2.dtype)          # bf16 only at MXU boundary
        out = jnp.dot(h, w2, preferred_element_type=jnp.float32)
        o_ref[...] = (out + b2).astype(o_ref.dtype)

    mlp(x1_ref, o1_ref)
    mlp(x2_ref, o2_ref)


def prepare_params(w1, b1, w2, b2, mxu_dtype=MXU_DTYPE):
    """One-time layout plumbing: transpose weights to (in, out); pad hidden/logit to 128 lanes.

    The contraction dim of the first matmul (feature) is intentionally NOT padded: the kernel is
    memory-bound, so extra K padding would only add bytes for zero useful FLOPs.
    """
    hidden, feature = w1.shape
    logit = w2.shape[0]
    h_pad = _round_up(hidden, LANE)
    l_pad = _round_up(logit, LANE)
    w1_t = jnp.zeros((feature, h_pad), mxu_dtype).at[:, :hidden].set(w1.T.astype(mxu_dtype))
    w2_t = jnp.zeros((h_pad, l_pad), mxu_dtype).at[:hidden, :logit].set(w2.T.astype(mxu_dtype))
    b1_p = jnp.zeros((1, h_pad), jnp.float32).at[:, :hidden].set(jnp.reshape(b1, (1, -1)))
    b2_p = jnp.zeros((1, l_pad), jnp.float32).at[:, :logit].set(jnp.reshape(b2, (1, -1)))
    return (w1_t, b1_p, w2_t, b2_p), (feature, hidden, logit)


@functools.partial(jax.jit, static_argnames=("dims",))
def linear_model_forward(x1, x2, packed, dims):
    """Reproduces LinearModel.forward: shared base applied to x1 and x2 (single fused launch)."""
    w1_t, b1_p, w2_t, b2_p = packed
    feature, hidden, logit = dims
    h_pad = w1_t.shape[1]
    l_pad = w2_t.shape[1]

    b = x1.shape[0]
    tm = _choose_row_tile(b)
    grid = (pl.cdiv(b, tm),)

    # Advisory cost estimate (real work, un-padded dims).
    flops = 2 * (2 * b) * (feature * hidden + hidden * logit)
    bytes_accessed = (2 * b * feature * 4                              # x1 + x2 reads (f32)
                      + (w1_t.size + w2_t.size) * 2                    # bf16 weights
                      + (b1_p.size + b2_p.size) * 4                    # f32 biases
                      + 2 * b * l_pad * 2)                             # two bf16 outputs

    # VMEM budget: double-buffered x/out blocks + double-buffered (but tiny, resident) weights.
    vmem_need = (2 * 2 * tm * feature * 4
                 + 2 * 2 * tm * l_pad * 2
                 + 2 * ((w1_t.size + w2_t.size) * 2 + (b1_p.size + b2_p.size) * 4))
    vmem_limit = int(min(max(2 * vmem_need, 32 * 1024 * 1024), 48 * 1024 * 1024))

    o1, o2 = pl.pallas_call(
        _mlp_kernel,
        out_shape=(
            jax.ShapeDtypeStruct((b, l_pad), jnp.bfloat16),
            jax.ShapeDtypeStruct((b, l_pad), jnp.bfloat16),
        ),
        grid_spec=pltpu.PrefetchScalarGridSpec(
            num_scalar_prefetch=0,
            grid=grid,
            in_specs=[
                pl.BlockSpec((tm, feature), lambda i: (i, 0)),    # x1 row tile (full feature dim)
                pl.BlockSpec((tm, feature), lambda i: (i, 0)),    # x2 row tile
                pl.BlockSpec((feature, h_pad), lambda i: (0, 0)),  # W1^T (resident)
                pl.BlockSpec((1, h_pad), lambda i: (0, 0)),        # b1
                pl.BlockSpec((h_pad, l_pad), lambda i: (0, 0)),    # W2^T (resident)
                pl.BlockSpec((1, l_pad), lambda i: (0, 0)),        # b2
            ],
            out_specs=(
                pl.BlockSpec((tm, l_pad), lambda i: (i, 0)),
                pl.BlockSpec((tm, l_pad), lambda i: (i, 0)),
            ),
        ),
        compiler_params=pltpu.CompilerParams(
            dimension_semantics=("parallel",),
            vmem_limit_bytes=vmem_limit),
        cost_estimate=pl.CostEstimate(
            flops=flops, transcendentals=0, bytes_accessed=bytes_accessed),
    )(x1, x2, w1_t, b1_p, w2_t, b2_p)

    # Slice away lane padding and upcast (fused with the slice by XLA).
    out1 = o1[:, :logit].astype(jnp.float32)
    out2 = o2[:, :logit].astype(jnp.float32)
    return out1, out2


def init_params(key, feature_size):
    """Deterministic init mirroring nn.Linear shapes (out_features, in_features)."""
    hidden = int(2 * feature_size / 3)
    logit_size = int(1 * hidden // 2)
    k1, k2, k3, k4 = jax.random.split(key, 4)
    lim1 = 1.0 / (feature_size ** 0.5)
    lim2 = 1.0 / (hidden ** 0.5)
    w1 = jax.random.uniform(k1, (hidden, feature_size), jnp.float32, -lim1, lim1)
    b1 = jax.random.uniform(k2, (1, hidden), jnp.float32, -lim1, lim1)
    w2 = jax.random.uniform(k3, (logit_size, hidden), jnp.float32, -lim2, lim2)
    b2 = jax.random.uniform(k4, (1, logit_size), jnp.float32, -lim2, lim2)
    return (w1, b1, w2, b2), hidden, logit_size


if __name__ == "__main__":
    feature_size = 48          # -> hidden = 32, logit_size = 16 (as the module implies)
    batch = 8

    key = jax.random.PRNGKey(0)
    kp, kx1, kx2 = jax.random.split(key, 3)

    params, hidden, logit_size = init_params(kp, feature_size)
    x1 = jax.random.normal(kx1, (batch, feature_size), jnp.float32)
    x2 = jax.random.normal(kx2, (batch, feature_size), jnp.float32)

    packed, dims = prepare_params(*params)
    out1, out2 = linear_model_forward(x1, x2, packed, dims)
    jax.block_until_ready((out1, out2))

    # Reference checks.
    w1, b1, w2, b2 = params

    def ref_f32(x):
        h = jnp.maximum(x @ w1.T + b1, 0.0)
        return h @ w2.T + b2

    def ref_bf16(x):  # same bf16-operand / f32-accumulate / bf16-output path as the kernel
        h = jnp.dot(x.astype(jnp.bfloat16), w1.T.astype(jnp.bfloat16),
                    preferred_element_type=jnp.float32) + b1
        h = jnp.maximum(h, 0.0).astype(jnp.bfloat16)
        out = jnp.dot(h, w2.T.astype(jnp.bfloat16),
                      preferred_element_type=jnp.float32) + b2
        return out.astype(jnp.bfloat16).astype(jnp.float32)

    assert out1.shape == (batch, logit_size) and out2.shape == (batch, logit_size)
    assert jnp.allclose(out1, ref_bf16(x1), atol=5e-3, rtol=5e-3)
    assert jnp.allclose(out2, ref_bf16(x2), atol=5e-3, rtol=5e-3)
    assert jnp.allclose(out1, ref_f32(x1), atol=3e-2, rtol=3e-2)   # bf16-operand tolerance
    assert jnp.allclose(out2, ref_f32(x2), atol=3e-2, rtol=3e-2)

    print("KERNEL_OK")
</pallas_src>

<mosaic_0001>
module attributes {stable_mosaic.version = 11 : i64} {
  func.func @_mlp_kernel(%arg0: i32, %arg1: memref<16x48xf32, #tpu.memory_space<vmem>>, %arg2: memref<16x48xf32, #tpu.memory_space<vmem>>, %arg3: memref<48x128xbf16, #tpu.memory_space<vmem>>, %arg4: memref<1x128xf32, #tpu.memory_space<vmem>>, %arg5: memref<128x128xbf16, #tpu.memory_space<vmem>>, %arg6: memref<1x128xf32, #tpu.memory_space<vmem>>, %arg7: memref<16x128xbf16, #tpu.memory_space<vmem>>, %arg8: memref<16x128xbf16, #tpu.memory_space<vmem>>) attributes {dimension_semantics = [#tpu.dimension_semantics<parallel>], iteration_bounds = array<i64: 1>, scalar_prefetch = 0 : i64, scratch_operands = 0 : i64, tpu.core_type = #tpu.core_type<tc>, window_params = [{transform_indices = @transform_0, window_bounds = array<i64: 16, 48>}, {transform_indices = @transform_1, window_bounds = array<i64: 16, 48>}, {pipeline_mode = #tpu.pipeline_mode<synchronous>, transform_indices = @transform_2, window_bounds = array<i64: 48, 128>}, {pipeline_mode = #tpu.pipeline_mode<synchronous>, transform_indices = @transform_3, window_bounds = array<i64: 1, 128>}, {pipeline_mode = #tpu.pipeline_mode<synchronous>, transform_indices = @transform_4, window_bounds = array<i64: 128, 128>}, {pipeline_mode = #tpu.pipeline_mode<synchronous>, transform_indices = @transform_5, window_bounds = array<i64: 1, 128>}, {transform_indices = @transform_6, window_bounds = array<i64: 16, 128>}, {transform_indices = @transform_7, window_bounds = array<i64: 16, 128>}]} {
    %c0 = arith.constant 0 : index
    %c0_0 = arith.constant 0 : index
    %0 = vector.load %arg3[%c0, %c0_0] : memref<48x128xbf16, #tpu.memory_space<vmem>>, vector<48x128xbf16>
    %c0_1 = arith.constant 0 : index
    %c0_2 = arith.constant 0 : index
    %1 = vector.load %arg4[%c0_1, %c0_2] : memref<1x128xf32, #tpu.memory_space<vmem>>, vector<1x128xf32>
    %c0_3 = arith.constant 0 : index
    %c0_4 = arith.constant 0 : index
    %2 = vector.load %arg5[%c0_3, %c0_4] : memref<128x128xbf16, #tpu.memory_space<vmem>>, vector<128x128xbf16>
    %c0_5 = arith.constant 0 : index
    %c0_6 = arith.constant 0 : index
    %3 = vector.load %arg6[%c0_5, %c0_6] : memref<1x128xf32, #tpu.memory_space<vmem>>, vector<1x128xf32>
    %c0_7 = arith.constant 0 : index
    %c0_8 = arith.constant 0 : index
    %4 = vector.load %arg1[%c0_7, %c0_8] : memref<16x48xf32, #tpu.memory_space<vmem>>, vector<16x48xf32>
    %5 = arith.truncf %4 : vector<16x48xf32> to vector<16x48xbf16>
    %cst = arith.constant dense<0.000000e+00> : vector<16x128xf32>
    %6 = tpu.matmul %5, %0, %cst {dimension_numbers = #tpu.dot_dimension_numbers<[1], [0], [0], [1], [0, 0, 1, 1], [], []>} : vector<16x48xbf16>, vector<48x128xbf16>, vector<16x128xf32> -> vector<16x128xf32>
    %7 = vector.broadcast %1 : vector<1x128xf32> to vector<16x128xf32>
    %8 = arith.addf %6, %7 : vector<16x128xf32>
    %cst_9 = arith.constant 0.000000e+00 : f32
    %9 = vector.broadcast %cst_9 : f32 to vector<16x128xf32>
    %10 = arith.maximumf %8, %9 : vector<16x128xf32>
    %11 = arith.truncf %10 : vector<16x128xf32> to vector<16x128xbf16>
    %cst_10 = arith.constant dense<0.000000e+00> : vector<16x128xf32>
    %12 = tpu.matmul %11, %2, %cst_10 {dimension_numbers = #tpu.dot_dimension_numbers<[1], [0], [0], [1], [0, 0, 1, 1], [], []>} : vector<16x128xbf16>, vector<128x128xbf16>, vector<16x128xf32> -> vector<16x128xf32>
    %13 = vector.broadcast %3 : vector<1x128xf32> to vector<16x128xf32>
    %14 = arith.addf %12, %13 : vector<16x128xf32>
    %15 = arith.truncf %14 : vector<16x128xf32> to vector<16x128xbf16>
    %c0_11 = arith.constant 0 : index
    %c0_12 = arith.constant 0 : index
    %16 = vector.load %arg7[%c0_11, %c0_12] : memref<16x128xbf16, #tpu.memory_space<vmem>>, vector<16x128xbf16>
    tpu.vector_store %arg7[%c0_11, %c0_12], %15 {strides = array<i32>} : memref<16x128xbf16, #tpu.memory_space<vmem>>, vector<16x128xbf16>,
    %c0_13 = arith.constant 0 : index
    %c0_14 = arith.constant 0 : index
    %17 = vector.load %arg2[%c0_13, %c0_14] : memref<16x48xf32, #tpu.memory_space<vmem>>, vector<16x48xf32>
    %18 = arith.truncf %17 : vector<16x48xf32> to vector<16x48xbf16>
    %cst_15 = arith.constant dense<0.000000e+00> : vector<16x128xf32>
    %19 = tpu.matmul %18, %0, %cst_15 {dimension_numbers = #tpu.dot_dimension_numbers<[1], [0], [0], [1], [0, 0, 1, 1], [], []>} : vector<16x48xbf16>, vector<48x128xbf16>, vector<16x128xf32> -> vector<16x128xf32>
    %20 = vector.broadcast %1 : vector<1x128xf32> to vector<16x128xf32>
    %21 = arith.addf %19, %20 : vector<16x128xf32>
    %cst_16 = arith.constant 0.000000e+00 : f32
    %22 = vector.broadcast %cst_16 : f32 to vector<16x128xf32>
    %23 = arith.maximumf %21, %22 : vector<16x128xf32>
    %24 = arith.truncf %23 : vector<16x128xf32> to vector<16x128xbf16>
    %cst_17 = arith.constant dense<0.000000e+00> : vector<16x128xf32>
    %25 = tpu.matmul %24, %2, %cst_17 {dimension_numbers = #tpu.dot_dimension_numbers<[1], [0], [0], [1], [0, 0, 1, 1], [], []>} : vector<16x128xbf16>, vector<128x128xbf16>, vector<16x128xf32> -> vector<16x128xf32>
    %26 = vector.broadcast %3 : vector<1x128xf32> to vector<16x128xf32>
    %27 = arith.addf %25, %26 : vector<16x128xf32>
    %28 = arith.truncf %27 : vector<16x128xf32> to vector<16x128xbf16>
    %c0_18 = arith.constant 0 : index
    %c0_19 = arith.constant 0 : index
    %29 = vector.load %arg8[%c0_18, %c0_19] : memref<16x128xbf16, #tpu.memory_space<vmem>>, vector<16x128xbf16>
    tpu.vector_store %arg8[%c0_18, %c0_19], %28 {strides = array<i32>} : memref<16x128xbf16, #tpu.memory_space<vmem>>, vector<16x128xbf16>,
    return
  }
  func.func @transform_0(%arg0: i32) -> (i32, i32) {
    %c0_i32 = arith.constant 0 : i32
    %c0_i32_0 = arith.constant 0 : i32
    return %arg0, %c0_i32 : i32, i32
  }
  func.func @transform_1(%arg0: i32) -> (i32, i32) {
    %c0_i32 = arith.constant 0 : i32
    %c0_i32_0 = arith.constant 0 : i32
    return %arg0, %c0_i32 : i32, i32
  }
  func.func @transform_2(%arg0: i32) -> (i32, i32) {
    %c0_i32 = arith.constant 0 : i32
    %c0_i32_0 = arith.constant 0 : i32
    %c0_i32_1 = arith.constant 0 : i32
    return %c0_i32, %c0_i32_0 : i32, i32
  }
  func.func @transform_3(%arg0: i32) -> (i32, i32) {
    %c0_i32 = arith.constant 0 : i32
    %c0_i32_0 = arith.constant 0 : i32
    %c0_i32_1 = arith.constant 0 : i32
    return %c0_i32, %c0_i32_0 : i32, i32
  }
  func.func @transform_4(%arg0: i32) -> (i32, i32) {
    %c0_i32 = arith.constant 0 : i32
    %c0_i32_0 = arith.constant 0 : i32
    %c0_i32_1 = arith.constant 0 : i32
    return %c0_i32, %c0_i32_0 : i32, i32
  }
  func.func @transform_5(%arg0: i32) -> (i32, i32) {
    %c0_i32 = arith.constant 0 : i32
    %c0_i32_0 = arith.constant 0 : i32
    %c0_i32_1 = arith.constant 0 : i32
    return %c0_i32, %c0_i32_0 : i32, i32
  }
  func.func @transform_6(%arg0: i32) -> (i32, i32) {
    %c0_i32 = arith.constant 0 : i32
    %c0_i32_0 = arith.constant 0 : i32
    return %arg0, %c0_i32 : i32, i32
  }
  func.func @transform_7(%arg0: i32) -> (i32, i32) {
    %c0_i32 = arith.constant 0 : i32
    %c0_i32_0 = arith.constant 0 : i32
    return %arg0, %c0_i32 : i32, i32
  }
}

</mosaic_0001>

<bundles_post_ra>
// kernel: linear_model_forward.1
= control target key start
LH: loop header
LB: loop body
LE: loop exit
PB: predicated region body
PF: predicated region fallthrough
CT: control target
= control target key end

     0   :  { %13 = vsyncpa [#allocation3], 0  ;;  %s604_s0 = inlined_call_operand.hbm [shape: f32[8,48], index: 0, kind: input, shape index: {}]   ;;  %s605_s1 = inlined_call_operand.hbm [shape: f32[8,48], index: 1, kind: input, shape index: {}]   ;;  %s606_s2 = inlined_call_operand.hbm [shape: bf16[48,128], index: 2, kind: input, shape index: {}]   ;;  %s607_s3 = inlined_call_operand.vmem [shape: f32[1,128], index: 3, kind: input, shape index: {}]   ;;  %s608_s4 = inlined_call_operand.hbm [shape: bf16[128,128], index: 4, kind: input, shape index: {}]   ;;  %s609_s5 = inlined_call_operand.vmem [shape: f32[1,128], index: 5, kind: input, shape index: {}]   ;;  %s610_s6 = inlined_call_operand.vmem [shape: bf16[8,128], index: 6, kind: output, shape index: {0}]   ;;  %s611_s7 = inlined_call_operand.vmem [shape: bf16[8,128], index: 7, kind: output, shape index: {1}]  }
   0x1   :  { %14 = vsyncpa [#allocation5], 0 }
   0x2   :  { %15 = vsyncpa [#allocation8], 0 }
   0x3   :  { %19 = vsyncadd [#allocation3], 128  ;;  %s20_s26 = sshll.u32 %s604_s0, 4  ;;  %s532_s27 = smov [#allocation2]   ;;  %s21_s26 = int_to_ptr.hbm [resolvable:$true] %s20_s26 }
   0x4   :  { %s22_s28 = sshll.u32 %s532_s27, 4  ;;  %s533_s29 = smov 128   ;;  %s23_s28 = int_to_ptr.vmem [resolvable:$true] %s22_s28 }
   0x5   :  { %s534_s30 = smov 8  }
   0x6   :  { %28 = dma.hbm_to_vmem [thread:$0]  %s21_s26, 128, %s23_s28, [#allocation3], %s533_s29, %s533_s29, %s534_s30  }
   0x7   :  { %32 = vsyncadd [#allocation5], 128  ;;  %s33_s10 = sshll.u32 %s605_s1, 4  ;;  %s535_s11 = smov [#allocation4]   ;;  %s34_s10 = int_to_ptr.hbm [resolvable:$true] %s33_s10 }
   0x8   :  { %s35_s12 = sshll.u32 %s535_s11, 4  ;;  %s46_s0 = sshll.u32 %s606_s2, 4  ;;  %s36_s12 = int_to_ptr.vmem [resolvable:$true] %s35_s12  ;;  %s47_s0 = int_to_ptr.hbm [resolvable:$true] %s46_s0 }
   0x9   :  { %41 = dma.hbm_to_vmem [thread:$0]  %s34_s10, 128, %s36_s12, [#allocation5], %s533_s29, %s533_s29, %s534_s30  }
   0xa   :  { %s536_s15 = smov [#allocation6]   ;;  %s537_s17 = smov 64  }
   0xb   :  { %s48_s16 = sshll.u32 %s536_s15, 4  ;;  %s538_s18 = smov 4   ;;  %s49_s16 = int_to_ptr.vmem [resolvable:$true] %s48_s16 }
   0xc   :  { %54 = dma.hbm_to_vmem [thread:$0]  %s47_s0, 384, %s49_s16, [#allocation5], %s537_s17, %s537_s17, %s538_s18  }
   0xd   :  { %s61_s1 = sshll.u32 %s608_s4, 4  ;;  %s539_s21 = smov [#allocation7]   ;;  %s62_s1 = int_to_ptr.hbm [resolvable:$true] %s61_s1 }
   0xe   :  { %s63_s22 = sshll.u32 %s539_s21, 4  ;;  %s64_s22 = int_to_ptr.vmem [resolvable:$true] %s63_s22 }
   0xf   :  { %69 = dma.hbm_to_vmem [thread:$0]  %s62_s1, 1024, %s64_s22, [#allocation8], %s537_s17, %s537_s17, %s538_s18  }
  0x10   :  { %526 = dma.done.wait [#allocation3], 256  }
  0x11   :  { %527 = vsyncadd [#allocation3], 4294967040 }
  0x12   :  { %528 = dma.done.wait [#allocation5], 640  }
  0x13   :  { %529 = vsyncadd [#allocation5], 4294966656 }
  0x14   :  { %530 = dma.done.wait [#allocation8], 1024  }
  0x15   :  { %531 = vsyncadd [#allocation8], 4294966272  ;;  %v401_v0 = vld [vmem:[#allocation6 + $0x10] sm:$0xff]  ;;  %v400_v1 = vld [vmem:[#allocation6 + $0x8] sm:$0xff]  ;;  %vm137_vm0 = vcmask 392192  }
  0x16   :  { %146 = vmatpush.bf16.msra.mxu0 %v401_v0  ;;  %238 = vmatpush.bf16.msra.mxu2 %v401_v0  ;;  %v409_v2 = vld [vmem:[#allocation7 + $0x38] sm:$0xff]  ;;  %v408_v3 = vld [vmem:[#allocation7 + $0x30] sm:$0xff]  ;;  %v399_v4 = vld [vmem:[#allocation6] sm:$0xff] }
  0x17   :  { %209 = vmatpush.bf16.msra.mxu1 %v409_v2  ;;  %250 = vmatpush.bf16.msra.mxu3 %v409_v2  ;;  %v113_v5 = vld [vmem:[#allocation2] sm:$0xff]  ;;  %v114_v6 = vld [vmem:[#allocation2 + $0x8] sm:$0xff]  ;;  %v227_v7 = vld [vmem:[#allocation4] sm:$0xff] }
  0x18   :  { %v228_v8 = vld [vmem:[#allocation4 + $0x8] sm:$0xff]  ;;  %v407_v9 = vld [vmem:[#allocation7 + $0x28] sm:$0xff]  ;;  %v115_v10 = vpack.c.bf16 %v114_v6, %v113_v5  ;;  %v405_v13 = vld [vmem:[#allocation7 + $0x18] sm:$0xff] }
  0x19   :  { %v229_v11 = vpack.c.bf16 %v228_v8, %v227_v7  ;;  %v406_v12 = vld [vmem:[#allocation7 + $0x20] sm:$0xff]  ;;  %v404_v14 = vld [vmem:[#allocation7 + $0x10] sm:$0xff]  ;;  %v403_v15 = vld [vmem:[#allocation7 + $0x8] sm:$0xff] }
  0x1a   :  { %147 = vmatpush.bf16.msra.mxu0 %v400_v1  ;;  %239 = vmatpush.bf16.msra.mxu2 %v400_v1  ;;  %v402_v16 = vld [vmem:[#allocation7] sm:$0xff]  ;;  %v428_v18 = vld [vmem:[%s607_s3] ss:$0 sm:$0xff] }
  0x1b   :  { %210 = vmatpush.bf16.msra.mxu1 %v408_v3  ;;  %251 = vmatpush.bf16.msra.mxu3 %v408_v3  ;;  %v429_v33 = vld [vmem:[%s609_s5] ss:$0 sm:$0xff] }
  0x1e   :  { %148 = vmatpush.bf16.msra.mxu0 %v399_v4  ;;  %240 = vmatpush.bf16.msra.mxu2 %v399_v4 }
  0x1f   :  { %211 = vmatpush.bf16.msra.mxu1 %v407_v9  ;;  %252 = vmatpush.bf16.msra.mxu3 %v407_v9 }
  0x21   :  { %365 = vmatmul.msk.bf16.vlgmr.msra.gmra.mxu0 %vm137_vm0, %v115_v10  ;;  %398 = vmatmul.msk.bf16.vlgmr.msra.gmra.mxu2 %vm137_vm0, %v229_v11 }
  0x23   :  { %212 = vmatpush.bf16.msra.mxu1 %v406_v12  ;;  %253 = vmatpush.bf16.msra.mxu3 %v406_v12 }
  0x27   :  { %213 = vmatpush.bf16.msra.mxu1 %v405_v13  ;;  %254 = vmatpush.bf16.msra.mxu3 %v405_v13 }
  0x2b   :  { %214 = vmatpush.bf16.msra.mxu1 %v404_v14  ;;  %255 = vmatpush.bf16.msra.mxu3 %v404_v14 }
  0x2f   :  { %215 = vmatpush.bf16.msra.mxu1 %v403_v15  ;;  %256 = vmatpush.bf16.msra.mxu3 %v403_v15 }
  0x33   :  { %216 = vmatpush.bf16.msra.mxu1 %v402_v16  ;;  %257 = vmatpush.bf16.msra.mxu3 %v402_v16 }
  0x9e   :  { %v150_v17 = vpop.f32.mrf.mxu0 }
  0x9f   :  { %v151_v19 = vadd.f32 %v428_v18, %v150_v17 }
  0xa1   :  { %v155_v22 = vmax.f32 %v151_v19, 0.0 }
  0xa4   :  { %v242_v20 = vpop.f32.mrf.mxu2 }
  0xa5   :  { %v243_v25 = vadd.f32 %v428_v18, %v242_v20 }
  0xa6   :  { %v152_v21 = vpop.f32.mrf.mxu0 }
  0xa7   :  { %v153_v23 = vadd.f32 %v428_v18, %v152_v21  ;;  %v247_v29 = vmax.f32 %v243_v25, 0.0 }
  0xa9   :  { %v156_v24 = vmax.f32 %v153_v23, 0.0 }
  0xab   :  { %v157_v26 = vpack.c.bf16 %v156_v24, %v155_v22 }
  0xac   :  { %v244_v27 = vpop.f32.mrf.mxu2 }
  0xad   :  { %v245_v28 = vadd.f32 %v428_v18, %v244_v27  ;;  %217 = vmatmul.bf16.vlgmr.msra.gmra.mxu1 %v157_v26 }
  0xaf   :  { %v248_v30 = vmax.f32 %v245_v28, 0.0 }
  0xb1   :  { %v249_v31 = vpack.c.bf16 %v248_v30, %v247_v29 }
  0xb3   :  { %258 = vmatmul.bf16.vlgmr.msra.gmra.mxu3 %v249_v31 }
 0x12a   :  { %v218_v32 = vpop.f32.mrf.mxu1 }
 0x12b   :  { %v219_v35 = vadd.f32 %v429_v33, %v218_v32 }
 0x132   :  { %v220_v34 = vpop.f32.mrf.mxu1 }
 0x133   :  { %v221_v36 = vadd.f32 %v429_v33, %v220_v34 }
 0x135   :  { %v413_v37 = vpack.c.bf16 %v221_v36, %v219_v35 }
 0x136   :  { %v259_v38 = vpop.f32.mrf.mxu3 }
 0x137   :  { %414 = vst [vmem:[#allocation9] sm:$0xff] %v413_v37   ;;  %v260_v41 = vadd.f32 %v429_v33, %v259_v38 }
 0x13e   :  { %v286_v39 = vld [vmem:[#allocation9] sm:$0xf]  ;;  %v261_v40 = vpop.f32.mrf.mxu3 }
 0x13f   :  { %287 = vst [vmem:[%s610_s6] sm:$0xf] %v286_v39  ;;  %v262_v42 = vadd.f32 %v429_v33, %v261_v40 }
 0x141   :  { %v418_v43 = vpack.c.bf16 %v262_v42, %v260_v41 }
 0x143   :  { %419 = vst [vmem:[#allocation10] sm:$0xff] %v418_v43  }
 0x14a   :  { %v321_v44 = vld [vmem:[#allocation10] sm:$0xf] }
 0x14b   :  { %322 = vst [vmem:[%s611_s7] sm:$0xf] %v321_v44 }
 0x14c   :  { %342 = vsyncpa [#allocation3], 1 }
 0x14d   :  { %343 = vsyncpa [#allocation5], 1 }
 0x14e   :  { %344 = vsyncpa [#allocation8], 1 }

</bundles_post_ra>
